<compile_context>
chip_gen: v7x
topology: tpu7x:2x2x1
jax: 0.10.0
libtpu: 0.0.40
codegen_flags: <defaults>
</compile_context>

<pallas_src>
import jax
import jax.numpy as jnp
from jax.experimental import pallas as pl
from jax.experimental.pallas import tpu as pltpu

# Logical layer dims of SimpleModelUneven: 5 -> 10 -> 15 -> 30 -> 5
LAYER_DIMS = [(5, 10), (10, 15), (15, 30), (30, 5)]
ROW_OFFSETS = [0, 5, 15, 30]   # start row of each W_i inside the packed slab
W_SLAB_ROWS = 64               # 5+10+15+30 = 60 rows, padded to sublane multiple
LANES = 128                    # vreg lane width (all feature dims <= 30)
B_PAD = 8                      # batch padded to sublane multiple


def mlp_kernel(x_ref, w_ref, b_ref, o_ref):
    """Fused forward: relu(relu(relu(x@W1+b1)@W2+b2)@W3+b3)@W4+b4.

    All operands are small zero-padded lane-dense slabs resident in VMEM.
    Each layer is computed as bias + sum_k x[:, k] * W[k, :] (rank-1 updates
    on the VPU) -- avoids four serially-dependent sub-1% MXU matmuls.
    """
    h = x_ref[...]  # (B_PAD, LANES); only the first 5 lanes carry real data
    for layer, (k_in, _) in enumerate(LAYER_DIMS):
        row0 = ROW_OFFSETS[layer]
        # Bias row for this layer, broadcast over the (padded) batch sublanes.
        acc = jnp.broadcast_to(b_ref[layer:layer + 1, :], (B_PAD, LANES))
        # Unrolled contraction (K <= 30): pure VPU mul+add, features on lanes.
        for i in range(k_in):
            acc = acc + h[:, i:i + 1] * w_ref[row0 + i:row0 + i + 1, :]
        if layer < len(LAYER_DIMS) - 1:
            h = jnp.maximum(acc, 0.0)
        else:
            h = acc
    o_ref[...] = h  # full (8, 128) unmasked store; wrapper slices [:batch, :5]


def pack_params(params):
    """Pack W1..W4 (stored as (in, out)) and b1..b4 into two padded slabs."""
    w_slab = jnp.zeros((W_SLAB_ROWS, LANES), jnp.float32)
    b_slab = jnp.zeros((B_PAD, LANES), jnp.float32)
    for idx, ((k_in, k_out), row0) in enumerate(zip(LAYER_DIMS, ROW_OFFSETS)):
        w = params[f"w{idx + 1}"]          # (k_in, k_out)
        b = params[f"b{idx + 1}"]          # (1, k_out)
        w_slab = w_slab.at[row0:row0 + k_in, :k_out].set(w)
        b_slab = b_slab.at[idx, :k_out].set(b[0])
    return w_slab, b_slab


def simple_model_uneven_forward(x, params):
    """x: (batch, 5) float32.  params: dict of transposed weights / 2D biases."""
    batch, in_dim = x.shape
    assert batch <= B_PAD and in_dim == LAYER_DIMS[0][0]
    out_dim = LAYER_DIMS[-1][1]

    w_slab, b_slab = pack_params(params)
    x_pad = jnp.zeros((B_PAD, LANES), jnp.float32).at[:batch, :in_dim].set(x)

    vmem = pl.BlockSpec(memory_space=pltpu.MemorySpace.VMEM)
    flops = 2 * batch * sum(ki * ko for ki, ko in LAYER_DIMS)
    bytes_accessed = 4 * (3 * B_PAD * LANES + W_SLAB_ROWS * LANES)

    # TODO(synk): if batch ever grows, add a grid over the batch axis with
    # dimension_semantics=("parallel",) so v7x's second TensorCore engages.
    out_pad = pl.pallas_call(
        mlp_kernel,
        out_shape=jax.ShapeDtypeStruct((B_PAD, LANES), jnp.float32),
        in_specs=[vmem, vmem, vmem],
        out_specs=vmem,
        cost_estimate=pl.CostEstimate(
            flops=flops, transcendentals=0, bytes_accessed=bytes_accessed),
    )(x_pad, w_slab, b_slab)

    return out_pad[:batch, :out_dim]


def init_params(key):
    """Deterministic init mimicking nn.Linear (uniform +/- 1/sqrt(fan_in)).

    Weights are stored already transposed to (in, out); biases are (1, out)."""
    params = {}
    for i, (fan_in, fan_out) in enumerate(LAYER_DIMS, start=1):
        key, kw, kb = jax.random.split(key, 3)
        bound = 1.0 / jnp.sqrt(jnp.float32(fan_in))
        params[f"w{i}"] = jax.random.uniform(
            kw, (fan_in, fan_out), jnp.float32, -bound, bound)
        params[f"b{i}"] = jax.random.uniform(
            kb, (1, fan_out), jnp.float32, -bound, bound)
    return params


def reference_forward(x, params):
    h = jnp.maximum(x @ params["w1"] + params["b1"], 0.0)
    h = jnp.maximum(h @ params["w2"] + params["b2"], 0.0)
    h = jnp.maximum(h @ params["w3"] + params["b3"], 0.0)
    return h @ params["w4"] + params["b4"]


if __name__ == "__main__":
    key = jax.random.PRNGKey(0)
    k_params, k_x = jax.random.split(key)

    params = init_params(k_params)
    # Matches SimpleModelUneven.get_input(): torch.rand(4, 5)
    x = jax.random.uniform(k_x, (4, 5), jnp.float32)

    out = simple_model_uneven_forward(x, params)
    out = jax.block_until_ready(out)

    ref = reference_forward(x, params)
    assert out.shape == (4, 5), out.shape
    assert jnp.allclose(out, ref, atol=1e-5, rtol=1e-5), "mismatch vs reference"

    print("KERNEL_OK")
</pallas_src>

<mosaic_0001>
module attributes {stable_mosaic.version = 11 : i64} {
  func.func @mlp_kernel(%arg0: memref<8x128xf32, #tpu.memory_space<vmem>>, %arg1: memref<64x128xf32, #tpu.memory_space<vmem>>, %arg2: memref<8x128xf32, #tpu.memory_space<vmem>>, %arg3: memref<8x128xf32, #tpu.memory_space<vmem>>) attributes {dimension_semantics = [], scalar_prefetch = 0 : i64, scratch_operands = 0 : i64, tpu.core_type = #tpu.core_type<tc>} {
    %c0 = arith.constant 0 : index
    %c0_0 = arith.constant 0 : index
    %0 = vector.load %arg0[%c0, %c0_0] : memref<8x128xf32, #tpu.memory_space<vmem>>, vector<8x128xf32>
    %c0_1 = arith.constant 0 : index
    %c0_2 = arith.constant 0 : index
    %1 = vector.load %arg2[%c0_1, %c0_2] : memref<8x128xf32, #tpu.memory_space<vmem>>, vector<1x128xf32>
    %2 = vector.shape_cast %1 : vector<1x128xf32> to vector<1x128xf32>
    %3 = vector.broadcast %2 : vector<1x128xf32> to vector<8x128xf32>
    %4 = vector.extract_strided_slice %0 {offsets = [0, 0], sizes = [8, 1], strides = [1, 1]} : vector<8x128xf32> to vector<8x1xf32>
    %c0_3 = arith.constant 0 : index
    %c0_4 = arith.constant 0 : index
    %5 = vector.load %arg1[%c0_3, %c0_4] : memref<64x128xf32, #tpu.memory_space<vmem>>, vector<1x128xf32>
    %6 = vector.broadcast %4 : vector<8x1xf32> to vector<8x128xf32>
    %7 = vector.broadcast %5 : vector<1x128xf32> to vector<8x128xf32>
    %8 = arith.mulf %6, %7 : vector<8x128xf32>
    %9 = arith.addf %3, %8 : vector<8x128xf32>
    %10 = vector.extract_strided_slice %0 {offsets = [0, 1], sizes = [8, 1], strides = [1, 1]} : vector<8x128xf32> to vector<8x1xf32>
    %c1 = arith.constant 1 : index
    %c0_5 = arith.constant 0 : index
    %11 = vector.load %arg1[%c1, %c0_5] : memref<64x128xf32, #tpu.memory_space<vmem>>, vector<1x128xf32>
    %12 = vector.broadcast %10 : vector<8x1xf32> to vector<8x128xf32>
    %13 = vector.broadcast %11 : vector<1x128xf32> to vector<8x128xf32>
    %14 = arith.mulf %12, %13 : vector<8x128xf32>
    %15 = arith.addf %9, %14 : vector<8x128xf32>
    %16 = vector.extract_strided_slice %0 {offsets = [0, 2], sizes = [8, 1], strides = [1, 1]} : vector<8x128xf32> to vector<8x1xf32>
    %c2 = arith.constant 2 : index
    %c0_6 = arith.constant 0 : index
    %17 = vector.load %arg1[%c2, %c0_6] : memref<64x128xf32, #tpu.memory_space<vmem>>, vector<1x128xf32>
    %18 = vector.broadcast %16 : vector<8x1xf32> to vector<8x128xf32>
    %19 = vector.broadcast %17 : vector<1x128xf32> to vector<8x128xf32>
    %20 = arith.mulf %18, %19 : vector<8x128xf32>
    %21 = arith.addf %15, %20 : vector<8x128xf32>
    %22 = vector.extract_strided_slice %0 {offsets = [0, 3], sizes = [8, 1], strides = [1, 1]} : vector<8x128xf32> to vector<8x1xf32>
    %c3 = arith.constant 3 : index
    %c0_7 = arith.constant 0 : index
    %23 = vector.load %arg1[%c3, %c0_7] : memref<64x128xf32, #tpu.memory_space<vmem>>, vector<1x128xf32>
    %24 = vector.broadcast %22 : vector<8x1xf32> to vector<8x128xf32>
    %25 = vector.broadcast %23 : vector<1x128xf32> to vector<8x128xf32>
    %26 = arith.mulf %24, %25 : vector<8x128xf32>
    %27 = arith.addf %21, %26 : vector<8x128xf32>
    %28 = vector.extract_strided_slice %0 {offsets = [0, 4], sizes = [8, 1], strides = [1, 1]} : vector<8x128xf32> to vector<8x1xf32>
    %c4 = arith.constant 4 : index
    %c0_8 = arith.constant 0 : index
    %29 = vector.load %arg1[%c4, %c0_8] : memref<64x128xf32, #tpu.memory_space<vmem>>, vector<1x128xf32>
    %30 = vector.broadcast %28 : vector<8x1xf32> to vector<8x128xf32>
    %31 = vector.broadcast %29 : vector<1x128xf32> to vector<8x128xf32>
    %32 = arith.mulf %30, %31 : vector<8x128xf32>
    %33 = arith.addf %27, %32 : vector<8x128xf32>
    %cst = arith.constant 0.000000e+00 : f32
    %34 = vector.broadcast %cst : f32 to vector<8x128xf32>
    %35 = arith.maximumf %33, %34 : vector<8x128xf32>
    %c1_9 = arith.constant 1 : index
    %c0_10 = arith.constant 0 : index
    %36 = vector.load %arg2[%c1_9, %c0_10] : memref<8x128xf32, #tpu.memory_space<vmem>>, vector<1x128xf32>
    %37 = vector.shape_cast %36 : vector<1x128xf32> to vector<1x128xf32>
    %38 = vector.broadcast %37 : vector<1x128xf32> to vector<8x128xf32>
    %39 = vector.extract_strided_slice %35 {offsets = [0, 0], sizes = [8, 1], strides = [1, 1]} : vector<8x128xf32> to vector<8x1xf32>
    %c5 = arith.constant 5 : index
    %c0_11 = arith.constant 0 : index
    %40 = vector.load %arg1[%c5, %c0_11] : memref<64x128xf32, #tpu.memory_space<vmem>>, vector<1x128xf32>
    %41 = vector.broadcast %39 : vector<8x1xf32> to vector<8x128xf32>
    %42 = vector.broadcast %40 : vector<1x128xf32> to vector<8x128xf32>
    %43 = arith.mulf %41, %42 : vector<8x128xf32>
    %44 = arith.addf %38, %43 : vector<8x128xf32>
    %45 = vector.extract_strided_slice %35 {offsets = [0, 1], sizes = [8, 1], strides = [1, 1]} : vector<8x128xf32> to vector<8x1xf32>
    %c6 = arith.constant 6 : index
    %c0_12 = arith.constant 0 : index
    %46 = vector.load %arg1[%c6, %c0_12] : memref<64x128xf32, #tpu.memory_space<vmem>>, vector<1x128xf32>
    %47 = vector.broadcast %45 : vector<8x1xf32> to vector<8x128xf32>
    %48 = vector.broadcast %46 : vector<1x128xf32> to vector<8x128xf32>
    %49 = arith.mulf %47, %48 : vector<8x128xf32>
    %50 = arith.addf %44, %49 : vector<8x128xf32>
    %51 = vector.extract_strided_slice %35 {offsets = [0, 2], sizes = [8, 1], strides = [1, 1]} : vector<8x128xf32> to vector<8x1xf32>
    %c7 = arith.constant 7 : index
    %c0_13 = arith.constant 0 : index
    %52 = vector.load %arg1[%c7, %c0_13] : memref<64x128xf32, #tpu.memory_space<vmem>>, vector<1x128xf32>
    %53 = vector.broadcast %51 : vector<8x1xf32> to vector<8x128xf32>
    %54 = vector.broadcast %52 : vector<1x128xf32> to vector<8x128xf32>
    %55 = arith.mulf %53, %54 : vector<8x128xf32>
    %56 = arith.addf %50, %55 : vector<8x128xf32>
    %57 = vector.extract_strided_slice %35 {offsets = [0, 3], sizes = [8, 1], strides = [1, 1]} : vector<8x128xf32> to vector<8x1xf32>
    %c8 = arith.constant 8 : index
    %c0_14 = arith.constant 0 : index
    %58 = vector.load %arg1[%c8, %c0_14] : memref<64x128xf32, #tpu.memory_space<vmem>>, vector<1x128xf32>
    %59 = vector.broadcast %57 : vector<8x1xf32> to vector<8x128xf32>
    %60 = vector.broadcast %58 : vector<1x128xf32> to vector<8x128xf32>
    %61 = arith.mulf %59, %60 : vector<8x128xf32>
    %62 = arith.addf %56, %61 : vector<8x128xf32>
    %63 = vector.extract_strided_slice %35 {offsets = [0, 4], sizes = [8, 1], strides = [1, 1]} : vector<8x128xf32> to vector<8x1xf32>
    %c9 = arith.constant 9 : index
    %c0_15 = arith.constant 0 : index
    %64 = vector.load %arg1[%c9, %c0_15] : memref<64x128xf32, #tpu.memory_space<vmem>>, vector<1x128xf32>
    %65 = vector.broadcast %63 : vector<8x1xf32> to vector<8x128xf32>
    %66 = vector.broadcast %64 : vector<1x128xf32> to vector<8x128xf32>
    %67 = arith.mulf %65, %66 : vector<8x128xf32>
    %68 = arith.addf %62, %67 : vector<8x128xf32>
    %69 = vector.extract_strided_slice %35 {offsets = [0, 5], sizes = [8, 1], strides = [1, 1]} : vector<8x128xf32> to vector<8x1xf32>
    %c10 = arith.constant 10 : index
    %c0_16 = arith.constant 0 : index
    %70 = vector.load %arg1[%c10, %c0_16] : memref<64x128xf32, #tpu.memory_space<vmem>>, vector<1x128xf32>
    %71 = vector.broadcast %69 : vector<8x1xf32> to vector<8x128xf32>
    %72 = vector.broadcast %70 : vector<1x128xf32> to vector<8x128xf32>
    %73 = arith.mulf %71, %72 : vector<8x128xf32>
    %74 = arith.addf %68, %73 : vector<8x128xf32>
    %75 = vector.extract_strided_slice %35 {offsets = [0, 6], sizes = [8, 1], strides = [1, 1]} : vector<8x128xf32> to vector<8x1xf32>
    %c11 = arith.constant 11 : index
    %c0_17 = arith.constant 0 : index
    %76 = vector.load %arg1[%c11, %c0_17] : memref<64x128xf32, #tpu.memory_space<vmem>>, vector<1x128xf32>
    %77 = vector.broadcast %75 : vector<8x1xf32> to vector<8x128xf32>
    %78 = vector.broadcast %76 : vector<1x128xf32> to vector<8x128xf32>
    %79 = arith.mulf %77, %78 : vector<8x128xf32>
    %80 = arith.addf %74, %79 : vector<8x128xf32>
    %81 = vector.extract_strided_slice %35 {offsets = [0, 7], sizes = [8, 1], strides = [1, 1]} : vector<8x128xf32> to vector<8x1xf32>
    %c12 = arith.constant 12 : index
    %c0_18 = arith.constant 0 : index
    %82 = vector.load %arg1[%c12, %c0_18] : memref<64x128xf32, #tpu.memory_space<vmem>>, vector<1x128xf32>
    %83 = vector.broadcast %81 : vector<8x1xf32> to vector<8x128xf32>
    %84 = vector.broadcast %82 : vector<1x128xf32> to vector<8x128xf32>
    %85 = arith.mulf %83, %84 : vector<8x128xf32>
    %86 = arith.addf %80, %85 : vector<8x128xf32>
    %87 = vector.extract_strided_slice %35 {offsets = [0, 8], sizes = [8, 1], strides = [1, 1]} : vector<8x128xf32> to vector<8x1xf32>
    %c13 = arith.constant 13 : index
    %c0_19 = arith.constant 0 : index
    %88 = vector.load %arg1[%c13, %c0_19] : memref<64x128xf32, #tpu.memory_space<vmem>>, vector<1x128xf32>
    %89 = vector.broadcast %87 : vector<8x1xf32> to vector<8x128xf32>
    %90 = vector.broadcast %88 : vector<1x128xf32> to vector<8x128xf32>
    %91 = arith.mulf %89, %90 : vector<8x128xf32>
    %92 = arith.addf %86, %91 : vector<8x128xf32>
    %93 = vector.extract_strided_slice %35 {offsets = [0, 9], sizes = [8, 1], strides = [1, 1]} : vector<8x128xf32> to vector<8x1xf32>
    %c14 = arith.constant 14 : index
    %c0_20 = arith.constant 0 : index
    %94 = vector.load %arg1[%c14, %c0_20] : memref<64x128xf32, #tpu.memory_space<vmem>>, vector<1x128xf32>
    %95 = vector.broadcast %93 : vector<8x1xf32> to vector<8x128xf32>
    %96 = vector.broadcast %94 : vector<1x128xf32> to vector<8x128xf32>
    %97 = arith.mulf %95, %96 : vector<8x128xf32>
    %98 = arith.addf %92, %97 : vector<8x128xf32>
    %cst_21 = arith.constant 0.000000e+00 : f32
    %99 = vector.broadcast %cst_21 : f32 to vector<8x128xf32>
    %100 = arith.maximumf %98, %99 : vector<8x128xf32>
    %c2_22 = arith.constant 2 : index
    %c0_23 = arith.constant 0 : index
    %101 = vector.load %arg2[%c2_22, %c0_23] : memref<8x128xf32, #tpu.memory_space<vmem>>, vector<1x128xf32>
    %102 = vector.shape_cast %101 : vector<1x128xf32> to vector<1x128xf32>
    %103 = vector.broadcast %102 : vector<1x128xf32> to vector<8x128xf32>
    %104 = vector.extract_strided_slice %100 {offsets = [0, 0], sizes = [8, 1], strides = [1, 1]} : vector<8x128xf32> to vector<8x1xf32>
    %c15 = arith.constant 15 : index
    %c0_24 = arith.constant 0 : index
    %105 = vector.load %arg1[%c15, %c0_24] : memref<64x128xf32, #tpu.memory_space<vmem>>, vector<1x128xf32>
    %106 = vector.broadcast %104 : vector<8x1xf32> to vector<8x128xf32>
    %107 = vector.broadcast %105 : vector<1x128xf32> to vector<8x128xf32>
    %108 = arith.mulf %106, %107 : vector<8x128xf32>
    %109 = arith.addf %103, %108 : vector<8x128xf32>
    %110 = vector.extract_strided_slice %100 {offsets = [0, 1], sizes = [8, 1], strides = [1, 1]} : vector<8x128xf32> to vector<8x1xf32>
    %c16 = arith.constant 16 : index
    %c0_25 = arith.constant 0 : index
    %111 = vector.load %arg1[%c16, %c0_25] : memref<64x128xf32, #tpu.memory_space<vmem>>, vector<1x128xf32>
    %112 = vector.broadcast %110 : vector<8x1xf32> to vector<8x128xf32>
    %113 = vector.broadcast %111 : vector<1x128xf32> to vector<8x128xf32>
    %114 = arith.mulf %112, %113 : vector<8x128xf32>
    %115 = arith.addf %109, %114 : vector<8x128xf32>
    %116 = vector.extract_strided_slice %100 {offsets = [0, 2], sizes = [8, 1], strides = [1, 1]} : vector<8x128xf32> to vector<8x1xf32>
    %c17 = arith.constant 17 : index
    %c0_26 = arith.constant 0 : index
    %117 = vector.load %arg1[%c17, %c0_26] : memref<64x128xf32, #tpu.memory_space<vmem>>, vector<1x128xf32>
    %118 = vector.broadcast %116 : vector<8x1xf32> to vector<8x128xf32>
    %119 = vector.broadcast %117 : vector<1x128xf32> to vector<8x128xf32>
    %120 = arith.mulf %118, %119 : vector<8x128xf32>
    %121 = arith.addf %115, %120 : vector<8x128xf32>
    %122 = vector.extract_strided_slice %100 {offsets = [0, 3], sizes = [8, 1], strides = [1, 1]} : vector<8x128xf32> to vector<8x1xf32>
    %c18 = arith.constant 18 : index
    %c0_27 = arith.constant 0 : index
    %123 = vector.load %arg1[%c18, %c0_27] : memref<64x128xf32, #tpu.memory_space<vmem>>, vector<1x128xf32>
    %124 = vector.broadcast %122 : vector<8x1xf32> to vector<8x128xf32>
    %125 = vector.broadcast %123 : vector<1x128xf32> to vector<8x128xf32>
    %126 = arith.mulf %124, %125 : vector<8x128xf32>
    %127 = arith.addf %121, %126 : vector<8x128xf32>
    %128 = vector.extract_strided_slice %100 {offsets = [0, 4], sizes = [8, 1], strides = [1, 1]} : vector<8x128xf32> to vector<8x1xf32>
    %c19 = arith.constant 19 : index
    %c0_28 = arith.constant 0 : index
    %129 = vector.load %arg1[%c19, %c0_28] : memref<64x128xf32, #tpu.memory_space<vmem>>, vector<1x128xf32>
    %130 = vector.broadcast %128 : vector<8x1xf32> to vector<8x128xf32>
    %131 = vector.broadcast %129 : vector<1x128xf32> to vector<8x128xf32>
    %132 = arith.mulf %130, %131 : vector<8x128xf32>
    %133 = arith.addf %127, %132 : vector<8x128xf32>
    %134 = vector.extract_strided_slice %100 {offsets = [0, 5], sizes = [8, 1], strides = [1, 1]} : vector<8x128xf32> to vector<8x1xf32>
    %c20 = arith.constant 20 : index
    %c0_29 = arith.constant 0 : index
    %135 = vector.load %arg1[%c20, %c0_29] : memref<64x128xf32, #tpu.memory_space<vmem>>, vector<1x128xf32>
    %136 = vector.broadcast %134 : vector<8x1xf32> to vector<8x128xf32>
    %137 = vector.broadcast %135 : vector<1x128xf32> to vector<8x128xf32>
    %138 = arith.mulf %136, %137 : vector<8x128xf32>
    %139 = arith.addf %133, %138 : vector<8x128xf32>
    %140 = vector.extract_strided_slice %100 {offsets = [0, 6], sizes = [8, 1], strides = [1, 1]} : vector<8x128xf32> to vector<8x1xf32>
    %c21 = arith.constant 21 : index
    %c0_30 = arith.constant 0 : index
    %141 = vector.load %arg1[%c21, %c0_30] : memref<64x128xf32, #tpu.memory_space<vmem>>, vector<1x128xf32>
    %142 = vector.broadcast %140 : vector<8x1xf32> to vector<8x128xf32>
    %143 = vector.broadcast %141 : vector<1x128xf32> to vector<8x128xf32>
    %144 = arith.mulf %142, %143 : vector<8x128xf32>
    %145 = arith.addf %139, %144 : vector<8x128xf32>
    %146 = vector.extract_strided_slice %100 {offsets = [0, 7], sizes = [8, 1], strides = [1, 1]} : vector<8x128xf32> to vector<8x1xf32>
    %c22 = arith.constant 22 : index
    %c0_31 = arith.constant 0 : index
    %147 = vector.load %arg1[%c22, %c0_31] : memref<64x128xf32, #tpu.memory_space<vmem>>, vector<1x128xf32>
    %148 = vector.broadcast %146 : vector<8x1xf32> to vector<8x128xf32>
    %149 = vector.broadcast %147 : vector<1x128xf32> to vector<8x128xf32>
    %150 = arith.mulf %148, %149 : vector<8x128xf32>
    %151 = arith.addf %145, %150 : vector<8x128xf32>
    %152 = vector.extract_strided_slice %100 {offsets = [0, 8], sizes = [8, 1], strides = [1, 1]} : vector<8x128xf32> to vector<8x1xf32>
    %c23 = arith.constant 23 : index
    %c0_32 = arith.constant 0 : index
    %153 = vector.load %arg1[%c23, %c0_32] : memref<64x128xf32, #tpu.memory_space<vmem>>, vector<1x128xf32>
    %154 = vector.broadcast %152 : vector<8x1xf32> to vector<8x128xf32>
    %155 = vector.broadcast %153 : vector<1x128xf32> to vector<8x128xf32>
    %156 = arith.mulf %154, %155 : vector<8x128xf32>
    %157 = arith.addf %151, %156 : vector<8x128xf32>
    %158 = vector.extract_strided_slice %100 {offsets = [0, 9], sizes = [8, 1], strides = [1, 1]} : vector<8x128xf32> to vector<8x1xf32>
    %c24 = arith.constant 24 : index
    %c0_33 = arith.constant 0 : index
    %159 = vector.load %arg1[%c24, %c0_33] : memref<64x128xf32, #tpu.memory_space<vmem>>, vector<1x128xf32>
    %160 = vector.broadcast %158 : vector<8x1xf32> to vector<8x128xf32>
    %161 = vector.broadcast %159 : vector<1x128xf32> to vector<8x128xf32>
    %162 = arith.mulf %160, %161 : vector<8x128xf32>
    %163 = arith.addf %157, %162 : vector<8x128xf32>
    %164 = vector.extract_strided_slice %100 {offsets = [0, 10], sizes = [8, 1], strides = [1, 1]} : vector<8x128xf32> to vector<8x1xf32>
    %c25 = arith.constant 25 : index
    %c0_34 = arith.constant 0 : index
    %165 = vector.load %arg1[%c25, %c0_34] : memref<64x128xf32, #tpu.memory_space<vmem>>, vector<1x128xf32>
    %166 = vector.broadcast %164 : vector<8x1xf32> to vector<8x128xf32>
    %167 = vector.broadcast %165 : vector<1x128xf32> to vector<8x128xf32>
    %168 = arith.mulf %166, %167 : vector<8x128xf32>
    %169 = arith.addf %163, %168 : vector<8x128xf32>
    %170 = vector.extract_strided_slice %100 {offsets = [0, 11], sizes = [8, 1], strides = [1, 1]} : vector<8x128xf32> to vector<8x1xf32>
    %c26 = arith.constant 26 : index
    %c0_35 = arith.constant 0 : index
    %171 = vector.load %arg1[%c26, %c0_35] : memref<64x128xf32, #tpu.memory_space<vmem>>, vector<1x128xf32>
    %172 = vector.broadcast %170 : vector<8x1xf32> to vector<8x128xf32>
    %173 = vector.broadcast %171 : vector<1x128xf32> to vector<8x128xf32>
    %174 = arith.mulf %172, %173 : vector<8x128xf32>
    %175 = arith.addf %169, %174 : vector<8x128xf32>
    %176 = vector.extract_strided_slice %100 {offsets = [0, 12], sizes = [8, 1], strides = [1, 1]} : vector<8x128xf32> to vector<8x1xf32>
    %c27 = arith.constant 27 : index
    %c0_36 = arith.constant 0 : index
    %177 = vector.load %arg1[%c27, %c0_36] : memref<64x128xf32, #tpu.memory_space<vmem>>, vector<1x128xf32>
    %178 = vector.broadcast %176 : vector<8x1xf32> to vector<8x128xf32>
    %179 = vector.broadcast %177 : vector<1x128xf32> to vector<8x128xf32>
    %180 = arith.mulf %178, %179 : vector<8x128xf32>
    %181 = arith.addf %175, %180 : vector<8x128xf32>
    %182 = vector.extract_strided_slice %100 {offsets = [0, 13], sizes = [8, 1], strides = [1, 1]} : vector<8x128xf32> to vector<8x1xf32>
    %c28 = arith.constant 28 : index
    %c0_37 = arith.constant 0 : index
    %183 = vector.load %arg1[%c28, %c0_37] : memref<64x128xf32, #tpu.memory_space<vmem>>, vector<1x128xf32>
    %184 = vector.broadcast %182 : vector<8x1xf32> to vector<8x128xf32>
    %185 = vector.broadcast %183 : vector<1x128xf32> to vector<8x128xf32>
    %186 = arith.mulf %184, %185 : vector<8x128xf32>
    %187 = arith.addf %181, %186 : vector<8x128xf32>
    %188 = vector.extract_strided_slice %100 {offsets = [0, 14], sizes = [8, 1], strides = [1, 1]} : vector<8x128xf32> to vector<8x1xf32>
    %c29 = arith.constant 29 : index
    %c0_38 = arith.constant 0 : index
    %189 = vector.load %arg1[%c29, %c0_38] : memref<64x128xf32, #tpu.memory_space<vmem>>, vector<1x128xf32>
    %190 = vector.broadcast %188 : vector<8x1xf32> to vector<8x128xf32>
    %191 = vector.broadcast %189 : vector<1x128xf32> to vector<8x128xf32>
    %192 = arith.mulf %190, %191 : vector<8x128xf32>
    %193 = arith.addf %187, %192 : vector<8x128xf32>
    %cst_39 = arith.constant 0.000000e+00 : f32
    %194 = vector.broadcast %cst_39 : f32 to vector<8x128xf32>
    %195 = arith.maximumf %193, %194 : vector<8x128xf32>
    %c3_40 = arith.constant 3 : index
    %c0_41 = arith.constant 0 : index
    %196 = vector.load %arg2[%c3_40, %c0_41] : memref<8x128xf32, #tpu.memory_space<vmem>>, vector<1x128xf32>
    %197 = vector.shape_cast %196 : vector<1x128xf32> to vector<1x128xf32>
    %198 = vector.broadcast %197 : vector<1x128xf32> to vector<8x128xf32>
    %199 = vector.extract_strided_slice %195 {offsets = [0, 0], sizes = [8, 1], strides = [1, 1]} : vector<8x128xf32> to vector<8x1xf32>
    %c30 = arith.constant 30 : index
    %c0_42 = arith.constant 0 : index
    %200 = vector.load %arg1[%c30, %c0_42] : memref<64x128xf32, #tpu.memory_space<vmem>>, vector<1x128xf32>
    %201 = vector.broadcast %199 : vector<8x1xf32> to vector<8x128xf32>
    %202 = vector.broadcast %200 : vector<1x128xf32> to vector<8x128xf32>
    %203 = arith.mulf %201, %202 : vector<8x128xf32>
    %204 = arith.addf %198, %203 : vector<8x128xf32>
    %205 = vector.extract_strided_slice %195 {offsets = [0, 1], sizes = [8, 1], strides = [1, 1]} : vector<8x128xf32> to vector<8x1xf32>
    %c31 = arith.constant 31 : index
    %c0_43 = arith.constant 0 : index
    %206 = vector.load %arg1[%c31, %c0_43] : memref<64x128xf32, #tpu.memory_space<vmem>>, vector<1x128xf32>
    %207 = vector.broadcast %205 : vector<8x1xf32> to vector<8x128xf32>
    %208 = vector.broadcast %206 : vector<1x128xf32> to vector<8x128xf32>
    %209 = arith.mulf %207, %208 : vector<8x128xf32>
    %210 = arith.addf %204, %209 : vector<8x128xf32>
    %211 = vector.extract_strided_slice %195 {offsets = [0, 2], sizes = [8, 1], strides = [1, 1]} : vector<8x128xf32> to vector<8x1xf32>
    %c32 = arith.constant 32 : index
    %c0_44 = arith.constant 0 : index
    %212 = vector.load %arg1[%c32, %c0_44] : memref<64x128xf32, #tpu.memory_space<vmem>>, vector<1x128xf32>
    %213 = vector.broadcast %211 : vector<8x1xf32> to vector<8x128xf32>
    %214 = vector.broadcast %212 : vector<1x128xf32> to vector<8x128xf32>
    %215 = arith.mulf %213, %214 : vector<8x128xf32>
    %216 = arith.addf %210, %215 : vector<8x128xf32>
    %217 = vector.extract_strided_slice %195 {offsets = [0, 3], sizes = [8, 1], strides = [1, 1]} : vector<8x128xf32> to vector<8x1xf32>
    %c33 = arith.constant 33 : index
    %c0_45 = arith.constant 0 : index
    %218 = vector.load %arg1[%c33, %c0_45] : memref<64x128xf32, #tpu.memory_space<vmem>>, vector<1x128xf32>
    %219 = vector.broadcast %217 : vector<8x1xf32> to vector<8x128xf32>
    %220 = vector.broadcast %218 : vector<1x128xf32> to vector<8x128xf32>
    %221 = arith.mulf %219, %220 : vector<8x128xf32>
    %222 = arith.addf %216, %221 : vector<8x128xf32>
    %223 = vector.extract_strided_slice %195 {offsets = [0, 4], sizes = [8, 1], strides = [1, 1]} : vector<8x128xf32> to vector<8x1xf32>
    %c34 = arith.constant 34 : index
    %c0_46 = arith.constant 0 : index
    %224 = vector.load %arg1[%c34, %c0_46] : memref<64x128xf32, #tpu.memory_space<vmem>>, vector<1x128xf32>
    %225 = vector.broadcast %223 : vector<8x1xf32> to vector<8x128xf32>
    %226 = vector.broadcast %224 : vector<1x128xf32> to vector<8x128xf32>
    %227 = arith.mulf %225, %226 : vector<8x128xf32>
    %228 = arith.addf %222, %227 : vector<8x128xf32>
    %229 = vector.extract_strided_slice %195 {offsets = [0, 5], sizes = [8, 1], strides = [1, 1]} : vector<8x128xf32> to vector<8x1xf32>
    %c35 = arith.constant 35 : index
    %c0_47 = arith.constant 0 : index
    %230 = vector.load %arg1[%c35, %c0_47] : memref<64x128xf32, #tpu.memory_space<vmem>>, vector<1x128xf32>
    %231 = vector.broadcast %229 : vector<8x1xf32> to vector<8x128xf32>
    %232 = vector.broadcast %230 : vector<1x128xf32> to vector<8x128xf32>
    %233 = arith.mulf %231, %232 : vector<8x128xf32>
    %234 = arith.addf %228, %233 : vector<8x128xf32>
    %235 = vector.extract_strided_slice %195 {offsets = [0, 6], sizes = [8, 1], strides = [1, 1]} : vector<8x128xf32> to vector<8x1xf32>
    %c36 = arith.constant 36 : index
    %c0_48 = arith.constant 0 : index
    %236 = vector.load %arg1[%c36, %c0_48] : memref<64x128xf32, #tpu.memory_space<vmem>>, vector<1x128xf32>
    %237 = vector.broadcast %235 : vector<8x1xf32> to vector<8x128xf32>
    %238 = vector.broadcast %236 : vector<1x128xf32> to vector<8x128xf32>
    %239 = arith.mulf %237, %238 : vector<8x128xf32>
    %240 = arith.addf %234, %239 : vector<8x128xf32>
    %241 = vector.extract_strided_slice %195 {offsets = [0, 7], sizes = [8, 1], strides = [1, 1]} : vector<8x128xf32> to vector<8x1xf32>
    %c37 = arith.constant 37 : index
    %c0_49 = arith.constant 0 : index
    %242 = vector.load %arg1[%c37, %c0_49] : memref<64x128xf32, #tpu.memory_space<vmem>>, vector<1x128xf32>
    %243 = vector.broadcast %241 : vector<8x1xf32> to vector<8x128xf32>
    %244 = vector.broadcast %242 : vector<1x128xf32> to vector<8x128xf32>
    %245 = arith.mulf %243, %244 : vector<8x128xf32>
    %246 = arith.addf %240, %245 : vector<8x128xf32>
    %247 = vector.extract_strided_slice %195 {offsets = [0, 8], sizes = [8, 1], strides = [1, 1]} : vector<8x128xf32> to vector<8x1xf32>
    %c38 = arith.constant 38 : index
    %c0_50 = arith.constant 0 : index
    %248 = vector.load %arg1[%c38, %c0_50] : memref<64x128xf32, #tpu.memory_space<vmem>>, vector<1x128xf32>
    %249 = vector.broadcast %247 : vector<8x1xf32> to vector<8x128xf32>
    %250 = vector.broadcast %248 : vector<1x128xf32> to vector<8x128xf32>
    %251 = arith.mulf %249, %250 : vector<8x128xf32>
    %252 = arith.addf %246, %251 : vector<8x128xf32>
    %253 = vector.extract_strided_slice %195 {offsets = [0, 9], sizes = [8, 1], strides = [1, 1]} : vector<8x128xf32> to vector<8x1xf32>
    %c39 = arith.constant 39 : index
    %c0_51 = arith.constant 0 : index
    %254 = vector.load %arg1[%c39, %c0_51] : memref<64x128xf32, #tpu.memory_space<vmem>>, vector<1x128xf32>
    %255 = vector.broadcast %253 : vector<8x1xf32> to vector<8x128xf32>
    %256 = vector.broadcast %254 : vector<1x128xf32> to vector<8x128xf32>
    %257 = arith.mulf %255, %256 : vector<8x128xf32>
    %258 = arith.addf %252, %257 : vector<8x128xf32>
    %259 = vector.extract_strided_slice %195 {offsets = [0, 10], sizes = [8, 1], strides = [1, 1]} : vector<8x128xf32> to vector<8x1xf32>
    %c40 = arith.constant 40 : index
    %c0_52 = arith.constant 0 : index
    %260 = vector.load %arg1[%c40, %c0_52] : memref<64x128xf32, #tpu.memory_space<vmem>>, vector<1x128xf32>
    %261 = vector.broadcast %259 : vector<8x1xf32> to vector<8x128xf32>
    %262 = vector.broadcast %260 : vector<1x128xf32> to vector<8x128xf32>
    %263 = arith.mulf %261, %262 : vector<8x128xf32>
    %264 = arith.addf %258, %263 : vector<8x128xf32>
    %265 = vector.extract_strided_slice %195 {offsets = [0, 11], sizes = [8, 1], strides = [1, 1]} : vector<8x128xf32> to vector<8x1xf32>
    %c41 = arith.constant 41 : index
    %c0_53 = arith.constant 0 : index
    %266 = vector.load %arg1[%c41, %c0_53] : memref<64x128xf32, #tpu.memory_space<vmem>>, vector<1x128xf32>
    %267 = vector.broadcast %265 : vector<8x1xf32> to vector<8x128xf32>
    %268 = vector.broadcast %266 : vector<1x128xf32> to vector<8x128xf32>
    %269 = arith.mulf %267, %268 : vector<8x128xf32>
    %270 = arith.addf %264, %269 : vector<8x128xf32>
    %271 = vector.extract_strided_slice %195 {offsets = [0, 12], sizes = [8, 1], strides = [1, 1]} : vector<8x128xf32> to vector<8x1xf32>
    %c42 = arith.constant 42 : index
    %c0_54 = arith.constant 0 : index
    %272 = vector.load %arg1[%c42, %c0_54] : memref<64x128xf32, #tpu.memory_space<vmem>>, vector<1x128xf32>
    %273 = vector.broadcast %271 : vector<8x1xf32> to vector<8x128xf32>
    %274 = vector.broadcast %272 : vector<1x128xf32> to vector<8x128xf32>
    %275 = arith.mulf %273, %274 : vector<8x128xf32>
    %276 = arith.addf %270, %275 : vector<8x128xf32>
    %277 = vector.extract_strided_slice %195 {offsets = [0, 13], sizes = [8, 1], strides = [1, 1]} : vector<8x128xf32> to vector<8x1xf32>
    %c43 = arith.constant 43 : index
    %c0_55 = arith.constant 0 : index
    %278 = vector.load %arg1[%c43, %c0_55] : memref<64x128xf32, #tpu.memory_space<vmem>>, vector<1x128xf32>
    %279 = vector.broadcast %277 : vector<8x1xf32> to vector<8x128xf32>
    %280 = vector.broadcast %278 : vector<1x128xf32> to vector<8x128xf32>
    %281 = arith.mulf %279, %280 : vector<8x128xf32>
    %282 = arith.addf %276, %281 : vector<8x128xf32>
    %283 = vector.extract_strided_slice %195 {offsets = [0, 14], sizes = [8, 1], strides = [1, 1]} : vector<8x128xf32> to vector<8x1xf32>
    %c44 = arith.constant 44 : index
    %c0_56 = arith.constant 0 : index
    %284 = vector.load %arg1[%c44, %c0_56] : memref<64x128xf32, #tpu.memory_space<vmem>>, vector<1x128xf32>
    %285 = vector.broadcast %283 : vector<8x1xf32> to vector<8x128xf32>
    %286 = vector.broadcast %284 : vector<1x128xf32> to vector<8x128xf32>
    %287 = arith.mulf %285, %286 : vector<8x128xf32>
    %288 = arith.addf %282, %287 : vector<8x128xf32>
    %289 = vector.extract_strided_slice %195 {offsets = [0, 15], sizes = [8, 1], strides = [1, 1]} : vector<8x128xf32> to vector<8x1xf32>
    %c45 = arith.constant 45 : index
    %c0_57 = arith.constant 0 : index
    %290 = vector.load %arg1[%c45, %c0_57] : memref<64x128xf32, #tpu.memory_space<vmem>>, vector<1x128xf32>
    %291 = vector.broadcast %289 : vector<8x1xf32> to vector<8x128xf32>
    %292 = vector.broadcast %290 : vector<1x128xf32> to vector<8x128xf32>
    %293 = arith.mulf %291, %292 : vector<8x128xf32>
    %294 = arith.addf %288, %293 : vector<8x128xf32>
    %295 = vector.extract_strided_slice %195 {offsets = [0, 16], sizes = [8, 1], strides = [1, 1]} : vector<8x128xf32> to vector<8x1xf32>
    %c46 = arith.constant 46 : index
    %c0_58 = arith.constant 0 : index
    %296 = vector.load %arg1[%c46, %c0_58] : memref<64x128xf32, #tpu.memory_space<vmem>>, vector<1x128xf32>
    %297 = vector.broadcast %295 : vector<8x1xf32> to vector<8x128xf32>
    %298 = vector.broadcast %296 : vector<1x128xf32> to vector<8x128xf32>
    %299 = arith.mulf %297, %298 : vector<8x128xf32>
    %300 = arith.addf %294, %299 : vector<8x128xf32>
    %301 = vector.extract_strided_slice %195 {offsets = [0, 17], sizes = [8, 1], strides = [1, 1]} : vector<8x128xf32> to vector<8x1xf32>
    %c47 = arith.constant 47 : index
    %c0_59 = arith.constant 0 : index
    %302 = vector.load %arg1[%c47, %c0_59] : memref<64x128xf32, #tpu.memory_space<vmem>>, vector<1x128xf32>
    %303 = vector.broadcast %301 : vector<8x1xf32> to vector<8x128xf32>
    %304 = vector.broadcast %302 : vector<1x128xf32> to vector<8x128xf32>
    %305 = arith.mulf %303, %304 : vector<8x128xf32>
    %306 = arith.addf %300, %305 : vector<8x128xf32>
    %307 = vector.extract_strided_slice %195 {offsets = [0, 18], sizes = [8, 1], strides = [1, 1]} : vector<8x128xf32> to vector<8x1xf32>
    %c48 = arith.constant 48 : index
    %c0_60 = arith.constant 0 : index
    %308 = vector.load %arg1[%c48, %c0_60] : memref<64x128xf32, #tpu.memory_space<vmem>>, vector<1x128xf32>
    %309 = vector.broadcast %307 : vector<8x1xf32> to vector<8x128xf32>
    %310 = vector.broadcast %308 : vector<1x128xf32> to vector<8x128xf32>
    %311 = arith.mulf %309, %310 : vector<8x128xf32>
    %312 = arith.addf %306, %311 : vector<8x128xf32>
    %313 = vector.extract_strided_slice %195 {offsets = [0, 19], sizes = [8, 1], strides = [1, 1]} : vector<8x128xf32> to vector<8x1xf32>
    %c49 = arith.constant 49 : index
    %c0_61 = arith.constant 0 : index
    %314 = vector.load %arg1[%c49, %c0_61] : memref<64x128xf32, #tpu.memory_space<vmem>>, vector<1x128xf32>
    %315 = vector.broadcast %313 : vector<8x1xf32> to vector<8x128xf32>
    %316 = vector.broadcast %314 : vector<1x128xf32> to vector<8x128xf32>
    %317 = arith.mulf %315, %316 : vector<8x128xf32>
    %318 = arith.addf %312, %317 : vector<8x128xf32>
    %319 = vector.extract_strided_slice %195 {offsets = [0, 20], sizes = [8, 1], strides = [1, 1]} : vector<8x128xf32> to vector<8x1xf32>
    %c50 = arith.constant 50 : index
    %c0_62 = arith.constant 0 : index
    %320 = vector.load %arg1[%c50, %c0_62] : memref<64x128xf32, #tpu.memory_space<vmem>>, vector<1x128xf32>
    %321 = vector.broadcast %319 : vector<8x1xf32> to vector<8x128xf32>
    %322 = vector.broadcast %320 : vector<1x128xf32> to vector<8x128xf32>
    %323 = arith.mulf %321, %322 : vector<8x128xf32>
    %324 = arith.addf %318, %323 : vector<8x128xf32>
    %325 = vector.extract_strided_slice %195 {offsets = [0, 21], sizes = [8, 1], strides = [1, 1]} : vector<8x128xf32> to vector<8x1xf32>
    %c51 = arith.constant 51 : index
    %c0_63 = arith.constant 0 : index
    %326 = vector.load %arg1[%c51, %c0_63] : memref<64x128xf32, #tpu.memory_space<vmem>>, vector<1x128xf32>
    %327 = vector.broadcast %325 : vector<8x1xf32> to vector<8x128xf32>
    %328 = vector.broadcast %326 : vector<1x128xf32> to vector<8x128xf32>
    %329 = arith.mulf %327, %328 : vector<8x128xf32>
    %330 = arith.addf %324, %329 : vector<8x128xf32>
    %331 = vector.extract_strided_slice %195 {offsets = [0, 22], sizes = [8, 1], strides = [1, 1]} : vector<8x128xf32> to vector<8x1xf32>
    %c52 = arith.constant 52 : index
    %c0_64 = arith.constant 0 : index
    %332 = vector.load %arg1[%c52, %c0_64] : memref<64x128xf32, #tpu.memory_space<vmem>>, vector<1x128xf32>
    %333 = vector.broadcast %331 : vector<8x1xf32> to vector<8x128xf32>
    %334 = vector.broadcast %332 : vector<1x128xf32> to vector<8x128xf32>
    %335 = arith.mulf %333, %334 : vector<8x128xf32>
    %336 = arith.addf %330, %335 : vector<8x128xf32>
    %337 = vector.extract_strided_slice %195 {offsets = [0, 23], sizes = [8, 1], strides = [1, 1]} : vector<8x128xf32> to vector<8x1xf32>
    %c53 = arith.constant 53 : index
    %c0_65 = arith.constant 0 : index
    %338 = vector.load %arg1[%c53, %c0_65] : memref<64x128xf32, #tpu.memory_space<vmem>>, vector<1x128xf32>
    %339 = vector.broadcast %337 : vector<8x1xf32> to vector<8x128xf32>
    %340 = vector.broadcast %338 : vector<1x128xf32> to vector<8x128xf32>
    %341 = arith.mulf %339, %340 : vector<8x128xf32>
    %342 = arith.addf %336, %341 : vector<8x128xf32>
    %343 = vector.extract_strided_slice %195 {offsets = [0, 24], sizes = [8, 1], strides = [1, 1]} : vector<8x128xf32> to vector<8x1xf32>
    %c54 = arith.constant 54 : index
    %c0_66 = arith.constant 0 : index
    %344 = vector.load %arg1[%c54, %c0_66] : memref<64x128xf32, #tpu.memory_space<vmem>>, vector<1x128xf32>
    %345 = vector.broadcast %343 : vector<8x1xf32> to vector<8x128xf32>
    %346 = vector.broadcast %344 : vector<1x128xf32> to vector<8x128xf32>
    %347 = arith.mulf %345, %346 : vector<8x128xf32>
    %348 = arith.addf %342, %347 : vector<8x128xf32>
    %349 = vector.extract_strided_slice %195 {offsets = [0, 25], sizes = [8, 1], strides = [1, 1]} : vector<8x128xf32> to vector<8x1xf32>
    %c55 = arith.constant 55 : index
    %c0_67 = arith.constant 0 : index
    %350 = vector.load %arg1[%c55, %c0_67] : memref<64x128xf32, #tpu.memory_space<vmem>>, vector<1x128xf32>
    %351 = vector.broadcast %349 : vector<8x1xf32> to vector<8x128xf32>
    %352 = vector.broadcast %350 : vector<1x128xf32> to vector<8x128xf32>
    %353 = arith.mulf %351, %352 : vector<8x128xf32>
    %354 = arith.addf %348, %353 : vector<8x128xf32>
    %355 = vector.extract_strided_slice %195 {offsets = [0, 26], sizes = [8, 1], strides = [1, 1]} : vector<8x128xf32> to vector<8x1xf32>
    %c56 = arith.constant 56 : index
    %c0_68 = arith.constant 0 : index
    %356 = vector.load %arg1[%c56, %c0_68] : memref<64x128xf32, #tpu.memory_space<vmem>>, vector<1x128xf32>
    %357 = vector.broadcast %355 : vector<8x1xf32> to vector<8x128xf32>
    %358 = vector.broadcast %356 : vector<1x128xf32> to vector<8x128xf32>
    %359 = arith.mulf %357, %358 : vector<8x128xf32>
    %360 = arith.addf %354, %359 : vector<8x128xf32>
    %361 = vector.extract_strided_slice %195 {offsets = [0, 27], sizes = [8, 1], strides = [1, 1]} : vector<8x128xf32> to vector<8x1xf32>
    %c57 = arith.constant 57 : index
    %c0_69 = arith.constant 0 : index
    %362 = vector.load %arg1[%c57, %c0_69] : memref<64x128xf32, #tpu.memory_space<vmem>>, vector<1x128xf32>
    %363 = vector.broadcast %361 : vector<8x1xf32> to vector<8x128xf32>
    %364 = vector.broadcast %362 : vector<1x128xf32> to vector<8x128xf32>
    %365 = arith.mulf %363, %364 : vector<8x128xf32>
    %366 = arith.addf %360, %365 : vector<8x128xf32>
    %367 = vector.extract_strided_slice %195 {offsets = [0, 28], sizes = [8, 1], strides = [1, 1]} : vector<8x128xf32> to vector<8x1xf32>
    %c58 = arith.constant 58 : index
    %c0_70 = arith.constant 0 : index
    %368 = vector.load %arg1[%c58, %c0_70] : memref<64x128xf32, #tpu.memory_space<vmem>>, vector<1x128xf32>
    %369 = vector.broadcast %367 : vector<8x1xf32> to vector<8x128xf32>
    %370 = vector.broadcast %368 : vector<1x128xf32> to vector<8x128xf32>
    %371 = arith.mulf %369, %370 : vector<8x128xf32>
    %372 = arith.addf %366, %371 : vector<8x128xf32>
    %373 = vector.extract_strided_slice %195 {offsets = [0, 29], sizes = [8, 1], strides = [1, 1]} : vector<8x128xf32> to vector<8x1xf32>
    %c59 = arith.constant 59 : index
    %c0_71 = arith.constant 0 : index
    %374 = vector.load %arg1[%c59, %c0_71] : memref<64x128xf32, #tpu.memory_space<vmem>>, vector<1x128xf32>
    %375 = vector.broadcast %373 : vector<8x1xf32> to vector<8x128xf32>
    %376 = vector.broadcast %374 : vector<1x128xf32> to vector<8x128xf32>
    %377 = arith.mulf %375, %376 : vector<8x128xf32>
    %378 = arith.addf %372, %377 : vector<8x128xf32>
    %c0_72 = arith.constant 0 : index
    %c0_73 = arith.constant 0 : index
    %379 = vector.load %arg3[%c0_72, %c0_73] : memref<8x128xf32, #tpu.memory_space<vmem>>, vector<8x128xf32>
    tpu.vector_store %arg3[%c0_72, %c0_73], %378 {strides = array<i32>} : memref<8x128xf32, #tpu.memory_space<vmem>>, vector<8x128xf32>,
    return
  }
}

</mosaic_0001>

<bundles_post_ra>
// kernel: tpu_custom_call.1
= control target key start
LH: loop header
LB: loop body
LE: loop exit
PB: predicated region body
PF: predicated region fallthrough
CT: control target
= control target key end

     0   :  { %8 = vsyncpa [#allocation3], 0  ;;  %s1192_s0 = inlined_call_operand.hbm [shape: f32[8,128], index: 0, kind: input, shape index: {}]   ;;  %s1193_s1 = inlined_call_operand.hbm [shape: f32[64,128], index: 1, kind: input, shape index: {}]   ;;  %s1194_s2 = inlined_call_operand.hbm [shape: f32[8,128], index: 2, kind: input, shape index: {}]   ;;  %s1195_s3 = inlined_call_operand.hbm [shape: f32[8,128], index: 3, kind: output, shape index: {}]  }
   0x1   :  { %9 = vsyncpa [#allocation6], 0 }
   0x2   :  { %10 = vsyncpa [#allocation4], 0  ;;  %s1011_s12 = smov [#allocation5]   ;;  %s917_s16 = scalar_lea.hbm %s1193_s1, 1024 }
   0x3   :  { %s26_s13 = sshll.u32 %s1011_s12, 4  ;;  %p918_p0 = scmp.ne.s32.totalorder %s1193_s1, %s917_s16  ;;  %s27_s13 = int_to_ptr.vmem [resolvable:$true] %s26_s13 }
   0x4   :  { %p921_p1 = scmp.lt.u32.totalorder %s917_s16, %s1193_s1 }
   0x6   :  { %p923_p2 = pnand %p921_p1, %p918_p0 }
   0x8   :  { %926 = shalt.err (!%p923_p2)
}
   0x9   :  { %s927_s21 = scalar_lea.vmem %s27_s13, 1024  ;;  %p932_p4 = scmp.lt.s32.totalorder %s27_s13, %s27_s13 }
   0xa   :  { %p928_p3 = scmp.ne.s32.totalorder %s27_s13, %s927_s21  ;;  %p933_p5 = scmp.lt.s32.totalorder %s927_s21, %s927_s21 }
   0xc   :  { %p934_p6 = por %p933_p5, %p932_p4 }
   0xe   :  { %p935_p7 = pnand %p934_p6, %p928_p3 }
  0x10   :  { %938 = shalt.err (!%p935_p7)
}
  0x11   :  { %s1012_s22 = smov 128   ;;  %s1013_s23 = smov 8  }
  0x12   :  { %32 = dma.hbm_to_vmem [thread:$0]  %s1193_s1, 1024, %s27_s13, [#allocation6], %s1012_s22, %s1012_s22, %s1013_s23  }
  0x13   :  { %s1014_s26 = smov [#allocation2]   ;;  %s1015_s28 = smov [#allocation7]  }
  0x14   :  { %s17_s27 = sshll.u32 %s1014_s26, 4  ;;  %s39_s29 = sshll.u32 %s1015_s28, 4  ;;  %s18_s27 = int_to_ptr.vmem [resolvable:$true] %s17_s27  ;;  %s40_s29 = int_to_ptr.vmem [resolvable:$true] %s39_s29 }
  0x15   :  { %s939_s5 = scalar_lea.hbm %s1192_s0, 128 }
  0x16   :  { %p940_p8 = scmp.ne.s32.totalorder %s1192_s0, %s939_s5  ;;  %p943_p9 = scmp.lt.u32.totalorder %s939_s5, %s1192_s0 }
  0x18   :  { %p945_p10 = pnand %p943_p9, %p940_p8 }
  0x1a   :  { %948 = shalt.err (!%p945_p10)
}
  0x1b   :  { %s949_s1 = scalar_lea.vmem %s18_s27, 128  ;;  %p954_p12 = scmp.lt.s32.totalorder %s18_s27, %s18_s27 }
  0x1c   :  { %p950_p11 = scmp.ne.s32.totalorder %s18_s27, %s949_s1  ;;  %p955_p13 = scmp.lt.s32.totalorder %s949_s1, %s949_s1 }
  0x1e   :  { %p956_p0 = por %p955_p13, %p954_p12 }
  0x20   :  { %p957_p1 = pnand %p956_p0, %p950_p11 }
  0x22   :  { %960 = shalt.err (!%p957_p1)
}
  0x23   :  { %20 = dma.hbm_to_vmem [thread:$0]  %s1192_s0, 128, %s18_s27, [#allocation3]  }
  0x24   :  { %s961_s14 = scalar_lea.hbm %s1194_s2, 128 }
  0x25   :  { %p962_p2 = scmp.ne.s32.totalorder %s1194_s2, %s961_s14  ;;  %p965_p3 = scmp.lt.u32.totalorder %s961_s14, %s1194_s2 }
  0x27   :  { %p967_p4 = pnand %p965_p3, %p962_p2 }
  0x29   :  { %970 = shalt.err (!%p967_p4)
}
  0x2a   :  { %s971_s19 = scalar_lea.vmem %s40_s29, 128  ;;  %p976_p6 = scmp.lt.s32.totalorder %s40_s29, %s40_s29 }
  0x2b   :  { %p972_p5 = scmp.ne.s32.totalorder %s40_s29, %s971_s19  ;;  %p977_p7 = scmp.lt.s32.totalorder %s971_s19, %s971_s19 }
  0x2d   :  { %p978_p8 = por %p977_p7, %p976_p6 }
  0x2f   :  { %p979_p9 = pnand %p978_p8, %p972_p5 }
  0x31   :  { %982 = shalt.err (!%p979_p9)
}
  0x32   :  { %42 = dma.hbm_to_vmem [thread:$0]  %s1194_s2, 128, %s40_s29, [#allocation6]  }
  0x33   :  { %1005 = dma.done.wait [#allocation3], 128  }
  0x34   :  { %1006 = vsyncadd [#allocation3], 4294967168 }
  0x35   :  { %1007 = dma.done.wait [#allocation6], 1152  }
  0x36   :  { %1008 = vsyncadd [#allocation6], 4294966144  ;;  %v1016_v0 = vmov 0   ;;  %v1017_v1 = vmov 2   ;;  %v52_v2 = vld [vmem:[#allocation2] sm:$0xff]  ;;  %v1018_v3 = vmov 1  }
  0x37   :  { %857 = vset.pattern.permute.xlu0 %v1016_v0  ;;  %859 = vset.pattern.permute.xlu1 %v1017_v1  ;;  %v1019_v4 = vmov 3   ;;  %v1020_v5 = vmov 4   ;;  %v758_v6 = vld [vmem:[#allocation5] ss:$0 sm:$0xff]  ;;  %v759_v11 = vld [vmem:[#allocation5 + $0x1] ss:$0 sm:$0xff] }
  0x38   :  { %61 = vperm.xlu0 %857, %v52_v2   ;;  %83 = vperm.xlu1 %859, %v52_v2   ;;  %v757_v10 = vld [vmem:[#allocation7] ss:$0 sm:$0xff]  ;;  %v760_v12 = vld [vmem:[#allocation5 + $0x2] ss:$0 sm:$0xff]  ;;  %v761_v17 = vld [vmem:[#allocation5 + $0x3] ss:$0 sm:$0xff] }
  0x39   :  { %v762_v20 = vld [vmem:[#allocation5 + $0x4] ss:$0 sm:$0xff]  ;;  %v1021_v28 = vmov 6   ;;  %v1022_v29 = vmov 5   ;;  %v1023_v30 = vmov 9   ;;  %v1024_v31 = vmov 7  }
  0x3a   :  { %v1025_v32 = vmov 8   ;;  %v764_v33 = vld [vmem:[#allocation5 + $0x5] ss:$0 sm:$0xff]  ;;  %v765_v34 = vld [vmem:[#allocation5 + $0x6] ss:$0 sm:$0xff]  ;;  %s1046_s2 = smov [#allocation8]  }
  0x3b   :  { %v763_v36 = vld [vmem:[#allocation7 + $0x1] ss:$0 sm:$0xff]  ;;  %v766_v41 = vld [vmem:[#allocation5 + $0x7] ss:$0 sm:$0xff]  ;;  %v767_v45 = vld [vmem:[#allocation5 + $0x8] ss:$0 sm:$0xff] }
  0x3c   :  { %858 = vset.pattern.permute.xlu0 %v1018_v3  ;;  %860 = vset.pattern.permute.xlu1 %v1019_v4  ;;  %v768_v48 = vld [vmem:[#allocation5 + $0x9] ss:$0 sm:$0xff]  ;;  %v769_v53 = vld [vmem:[#allocation5 + $0xa] ss:$0 sm:$0xff]  ;;  %v770_v57 = vld [vmem:[#allocation5 + $0xb] ss:$0 sm:$0xff] }
  0x3d   :  { %72 = vperm.xlu0 %858, %v52_v2   ;;  %94 = vperm.xlu1 %860, %v52_v2   ;;  %v771_v60 = vld [vmem:[#allocation5 + $0xc] ss:$0 sm:$0xff]  ;;  %s747_s21 = sshll.u32 %s1046_s2, 4  ;;  %s748_s21 = int_to_ptr.vmem [resolvable:$true] %s747_s21 }
  0x3e   :  { %s983_s22 = scalar_lea.vmem %s748_s21, 128  ;;  %p988_p11 = scmp.lt.s32.totalorder %s748_s21, %s748_s21 }
  0x3f   :  { %p984_p10 = scmp.ne.s32.totalorder %s748_s21, %s983_s22  ;;  %p989_p12 = scmp.lt.s32.totalorder %s983_s22, %s983_s22 }
  0x41   :  { %861 = vset.pattern.permute.xlu1 %v1020_v5  ;;  %862 = vset.pattern.permute.xlu0 %v1016_v0  ;;  %p990_p13 = por %p989_p12, %p988_p11 }
  0x42   :  { %105 = vperm.xlu1 %861, %v52_v2  }
  0x43   :  { %p991_p0 = pnand %p990_p13, %p984_p10 }
  0x46   :  { %863 = vset.pattern.permute.xlu1 %v1018_v3 }
  0xb7   :  { %v62_v7 = vpop.permute.xlu0 %61  ;;  %v84_v8 = vpop.permute.xlu1 %83 }
  0xb8   :  { %v68_v9 = vmul.f32 %v758_v6, %v62_v7  ;;  %v90_v18 = vmul.f32 %v760_v12, %v84_v8  ;;  %v772_v6 = vld [vmem:[#allocation5 + $0xd] ss:$0 sm:$0xff]  ;;  %v773_v7 = vld [vmem:[#allocation5 + $0xe] ss:$0 sm:$0xff] }
  0xba   :  { %v69_v15 = vadd.f32 %v757_v10, %v68_v9 }
  0xbc   :  { %v73_v13 = vpop.permute.xlu0 %72  ;;  %v95_v14 = vpop.permute.xlu1 %94 }
  0xbd   :  { %v79_v16 = vmul.f32 %v759_v11, %v73_v13  ;;  %v101_v22 = vmul.f32 %v761_v17, %v95_v14  ;;  %v1027_v17 = vmov 14  }
  0xbf   :  { %v80_v19 = vadd.f32 %v79_v16, %v69_v15  ;;  %v1026_v16 = vmov 11  }
  0xc1   :  { %v91_v21 = vadd.f32 %v90_v18, %v80_v19  ;;  %v106_v23 = vpop.permute.xlu1 %105  ;;  %v1028_v18 = vmov 10   ;;  %v1029_v19 = vmov 12  }
  0xc2   :  { %v112_v24 = vmul.f32 %v762_v20, %v106_v23  ;;  %v1030_v20 = vmov 13   ;;  %v774_v23 = vld [vmem:[#allocation7 + $0x2] ss:$0 sm:$0xff] }
  0xc3   :  { %v102_v25 = vadd.f32 %v101_v22, %v91_v21  ;;  %v775_v21 = vld [vmem:[#allocation5 + $0xf] ss:$0 sm:$0xff] }
  0xc5   :  { %v113_v26 = vadd.f32 %v112_v24, %v102_v25  ;;  %v776_v24 = vld [vmem:[#allocation5 + $0x10] ss:$0 sm:$0xff] }
  0xc7   :  { %v114_v27 = vmax.f32 %v113_v26, 0.0 }
  0xc9   :  { %134 = vperm.xlu1 %863, %v114_v27   ;;  %123 = vperm.xlu0 %862, %v114_v27  }
  0xcd   :  { %864 = vset.pattern.permute.xlu1 %v1017_v1  ;;  %865 = vset.pattern.permute.xlu0 %v1019_v4 }
  0xce   :  { %145 = vperm.xlu1 %864, %v114_v27   ;;  %156 = vperm.xlu0 %865, %v114_v27  }
  0xd2   :  { %866 = vset.pattern.permute.xlu1 %v1020_v5  ;;  %868 = vset.pattern.permute.xlu0 %v1021_v28 }
  0xd3   :  { %167 = vperm.xlu1 %866, %v114_v27   ;;  %189 = vperm.xlu0 %868, %v114_v27  }
  0xd7   :  { %867 = vset.pattern.permute.xlu1 %v1022_v29  ;;  %871 = vset.pattern.permute.xlu0 %v1023_v30 }
  0xd8   :  { %178 = vperm.xlu1 %867, %v114_v27   ;;  %222 = vperm.xlu0 %871, %v114_v27  }
  0xdc   :  { %869 = vset.pattern.permute.xlu1 %v1024_v31  ;;  %874 = vset.pattern.permute.xlu0 %v1017_v1 }
  0xdd   :  { %200 = vperm.xlu1 %869, %v114_v27  }
  0xe1   :  { %870 = vset.pattern.permute.xlu1 %v1025_v32 }
  0xe2   :  { %211 = vperm.xlu1 %870, %v114_v27  }
  0xe6   :  { %872 = vset.pattern.permute.xlu1 %v1016_v0 }
 0x148   :  { %v135_v35 = vpop.permute.xlu1 %134  ;;  %v124_v37 = vpop.permute.xlu0 %123 }
 0x149   :  { %v130_v38 = vmul.f32 %v764_v33, %v124_v37  ;;  %v141_v39 = vmul.f32 %v765_v34, %v135_v35  ;;  %v777_v33 = vld [vmem:[#allocation5 + $0x11] ss:$0 sm:$0xff] }
 0x14b   :  { %v131_v40 = vadd.f32 %v763_v36, %v130_v38  ;;  %v778_v36 = vld [vmem:[#allocation5 + $0x12] ss:$0 sm:$0xff] }
 0x14d   :  { %v146_v42 = vpop.permute.xlu1 %145  ;;  %v142_v43 = vadd.f32 %v141_v39, %v131_v40  ;;  %v157_v46 = vpop.permute.xlu0 %156 }
 0x14e   :  { %v152_v44 = vmul.f32 %v766_v41, %v146_v42  ;;  %v163_v49 = vmul.f32 %v767_v45, %v157_v46  ;;  %v779_v41 = vld [vmem:[#allocation5 + $0x13] ss:$0 sm:$0xff] }
 0x150   :  { %v153_v47 = vadd.f32 %v152_v44, %v142_v43  ;;  %v780_v44 = vld [vmem:[#allocation5 + $0x14] ss:$0 sm:$0xff] }
 0x152   :  { %v168_v50 = vpop.permute.xlu1 %167  ;;  %v164_v51 = vadd.f32 %v163_v49, %v153_v47  ;;  %v190_v58 = vpop.permute.xlu0 %189  ;;  %v781_v47 = vld [vmem:[#allocation5 + $0x15] ss:$0 sm:$0xff] }
 0x153   :  { %v174_v52 = vmul.f32 %v768_v48, %v168_v50  ;;  %v196_v61 = vmul.f32 %v770_v57, %v190_v58 }
 0x155   :  { %v175_v55 = vadd.f32 %v174_v52, %v164_v51  ;;  %v782_v52 = vld [vmem:[#allocation5 + $0x16] ss:$0 sm:$0xff] }
 0x157   :  { %v179_v54 = vpop.permute.xlu1 %178  ;;  %v223_v8 = vpop.permute.xlu0 %222 }
 0x158   :  { %v185_v56 = vmul.f32 %v769_v53, %v179_v54  ;;  %v229_v12 = vmul.f32 %v773_v7, %v223_v8 }
 0x15a   :  { %v186_v59 = vadd.f32 %v185_v56, %v175_v55  ;;  %v783_v56 = vld [vmem:[#allocation5 + $0x17] ss:$0 sm:$0xff] }
 0x15c   :  { %v201_v62 = vpop.permute.xlu1 %200  ;;  %v197_v63 = vadd.f32 %v196_v61, %v186_v59  ;;  %v784_v59 = vld [vmem:[#allocation5 + $0x18] ss:$0 sm:$0xff] }
 0x15d   :  { %v207_v2 = vmul.f32 %v771_v60, %v201_v62 }
 0x15f   :  { %v208_v10 = vadd.f32 %v207_v2, %v197_v63  ;;  %v785_v2 = vld [vmem:[#allocation5 + $0x19] ss:$0 sm:$0xff] }
 0x161   :  { %v212_v9 = vpop.permute.xlu1 %211 }
 0x162   :  { %v218_v11 = vmul.f32 %v772_v6, %v212_v9  ;;  %v786_v9 = vld [vmem:[#allocation5 + $0x1a] ss:$0 sm:$0xff] }
 0x164   :  { %v219_v13 = vadd.f32 %v218_v11, %v208_v10 }
 0x166   :  { %v230_v14 = vadd.f32 %v229_v12, %v219_v13  ;;  %v787_v12 = vld [vmem:[#allocation5 + $0x1b] ss:$0 sm:$0xff] }
 0x168   :  { %v231_v15 = vmax.f32 %v230_v14, 0.0 }
 0x16a   :  { %262 = vperm.xlu0 %874, %v231_v15   ;;  %240 = vperm.xlu1 %872, %v231_v15  }
 0x16e   :  { %877 = vset.pattern.permute.xlu0 %v1022_v29  ;;  %873 = vset.pattern.permute.xlu1 %v1018_v3 }
 0x16f   :  { %295 = vperm.xlu0 %877, %v231_v15   ;;  %251 = vperm.xlu1 %873, %v231_v15  }
 0x173   :  { %880 = vset.pattern.permute.xlu0 %v1025_v32  ;;  %875 = vset.pattern.permute.xlu1 %v1019_v4 }
 0x174   :  { %328 = vperm.xlu0 %880, %v231_v15   ;;  %273 = vperm.xlu1 %875, %v231_v15  }
 0x178   :  { %883 = vset.pattern.permute.xlu0 %v1026_v16  ;;  %876 = vset.pattern.permute.xlu1 %v1020_v5 }
 0x179   :  { %361 = vperm.xlu0 %883, %v231_v15   ;;  %284 = vperm.xlu1 %876, %v231_v15  }
 0x17d   :  { %886 = vset.pattern.permute.xlu0 %v1027_v17  ;;  %878 = vset.pattern.permute.xlu1 %v1021_v28 }
 0x17e   :  { %394 = vperm.xlu0 %886, %v231_v15   ;;  %306 = vperm.xlu1 %878, %v231_v15  }
 0x182   :  { %879 = vset.pattern.permute.xlu1 %v1024_v31  ;;  %889 = vset.pattern.permute.xlu0 %v1017_v1 }
 0x183   :  { %317 = vperm.xlu1 %879, %v231_v15  }
 0x187   :  { %881 = vset.pattern.permute.xlu1 %v1023_v30 }
 0x188   :  { %339 = vperm.xlu1 %881, %v231_v15  }
 0x18c   :  { %882 = vset.pattern.permute.xlu1 %v1028_v18 }
 0x18d   :  { %350 = vperm.xlu1 %882, %v231_v15  }
 0x191   :  { %884 = vset.pattern.permute.xlu1 %v1029_v19 }
 0x192   :  { %372 = vperm.xlu1 %884, %v231_v15  }
 0x196   :  { %885 = vset.pattern.permute.xlu1 %v1030_v20 }
 0x197   :  { %383 = vperm.xlu1 %885, %v231_v15  }
 0x19b   :  { %887 = vset.pattern.permute.xlu1 %v1016_v0 }
 0x1e9   :  { %v241_v1 = vpop.permute.xlu1 %240  ;;  %v263_v34 = vpop.permute.xlu0 %262 }
 0x1ea   :  { %v247_v22 = vmul.f32 %v775_v21, %v241_v1  ;;  %v269_v37 = vmul.f32 %v777_v33, %v263_v34  ;;  %v788_v1 = vld [vmem:[#allocation5 + $0x1c] ss:$0 sm:$0xff] }
 0x1ec   :  { %v248_v26 = vadd.f32 %v774_v23, %v247_v22  ;;  %v789_v22 = vld [vmem:[#allocation5 + $0x1d] ss:$0 sm:$0xff] }
 0x1ee   :  { %v252_v25 = vpop.permute.xlu1 %251  ;;  %v296_v45 = vpop.permute.xlu0 %295 }
 0x1ef   :  { %v258_v27 = vmul.f32 %v776_v24, %v252_v25  ;;  %v302_v48 = vmul.f32 %v780_v44, %v296_v45  ;;  %v793_v45 = vld [vmem:[#allocation5 + $0x20] ss:$0 sm:$0xff] }
 0x1f1   :  { %v259_v35 = vadd.f32 %v258_v27, %v248_v26 }
 0x1f3   :  { %v274_v38 = vpop.permute.xlu1 %273  ;;  %v270_v39 = vadd.f32 %v269_v37, %v259_v35  ;;  %v329_v57 = vpop.permute.xlu0 %328  ;;  %v1045_v37 = vmov 28  }
 0x1f4   :  { %v280_v40 = vmul.f32 %v778_v36, %v274_v38  ;;  %v335_v60 = vmul.f32 %v783_v56, %v329_v57  ;;  %v1044_v36 = vmov 27   ;;  %v791_v38 = vld [vmem:[#allocation5 + $0x1e] ss:$0 sm:$0xff]  ;;  %v796_v57 = vld [vmem:[#allocation5 + $0x23] ss:$0 sm:$0xff] }
 0x1f6   :  { %v281_v43 = vadd.f32 %v280_v40, %v270_v39 }
 0x1f8   :  { %v285_v42 = vpop.permute.xlu1 %284  ;;  %v362_v10 = vpop.permute.xlu0 %361 }
 0x1f9   :  { %v291_v0 = vmul.f32 %v779_v41, %v285_v42  ;;  %v368_v13 = vmul.f32 %v786_v9, %v362_v10  ;;  %v790_v41 = vld [vmem:[#allocation7 + $0x3] ss:$0 sm:$0xff]  ;;  %v792_v42 = vld [vmem:[#allocation5 + $0x1f] ss:$0 sm:$0xff]  ;;  %v799_v10 = vld [vmem:[#allocation5 + $0x26] ss:$0 sm:$0xff] }
 0x1fb   :  { %v292_v46 = vadd.f32 %v291_v0, %v281_v43 }
 0x1fd   :  { %v307_v49 = vpop.permute.xlu1 %306  ;;  %v303_v50 = vadd.f32 %v302_v48, %v292_v46  ;;  %v395_v23 = vpop.permute.xlu0 %394  ;;  %v794_v48 = vld [vmem:[#allocation5 + $0x21] ss:$0 sm:$0xff] }
 0x1fe   :  { %v313_v51 = vmul.f32 %v781_v47, %v307_v49  ;;  %v401_v27 = vmul.f32 %v789_v22, %v395_v23  ;;  %v801_v22 = vld [vmem:[#allocation5 + $0x28] ss:$0 sm:$0xff] }
 0x200   :  { %v314_v54 = vadd.f32 %v313_v51, %v303_v50 }
 0x202   :  { %v318_v53 = vpop.permute.xlu1 %317 }
 0x203   :  { %v324_v55 = vmul.f32 %v782_v52, %v318_v53  ;;  %v795_v53 = vld [vmem:[#allocation5 + $0x22] ss:$0 sm:$0xff] }
 0x205   :  { %v325_v58 = vadd.f32 %v324_v55, %v314_v54 }
 0x207   :  { %v340_v61 = vpop.permute.xlu1 %339  ;;  %v336_v62 = vadd.f32 %v335_v60, %v325_v58  ;;  %v797_v60 = vld [vmem:[#allocation5 + $0x24] ss:$0 sm:$0xff] }
 0x208   :  { %v346_v63 = vmul.f32 %v784_v59, %v340_v61 }
 0x20a   :  { %v347_v7 = vadd.f32 %v346_v63, %v336_v62 }
 0x20c   :  { %v351_v6 = vpop.permute.xlu1 %350 }
 0x20d   :  { %v357_v8 = vmul.f32 %v785_v2, %v351_v6  ;;  %v798_v6 = vld [vmem:[#allocation5 + $0x25] ss:$0 sm:$0xff] }
 0x20f   :  { %v358_v11 = vadd.f32 %v357_v8, %v347_v7 }
 0x211   :  { %v373_v14 = vpop.permute.xlu1 %372  ;;  %v369_v15 = vadd.f32 %v368_v13, %v358_v11  ;;  %v800_v13 = vld [vmem:[#allocation5 + $0x27] ss:$0 sm:$0xff] }
 0x212   :  { %v379_v21 = vmul.f32 %v787_v12, %v373_v14 }
 0x214   :  { %v380_v25 = vadd.f32 %v379_v21, %v369_v15 }
 0x216   :  { %v384_v24 = vpop.permute.xlu1 %383 }
 0x217   :  { %v390_v26 = vmul.f32 %v788_v1, %v384_v24 }
 0x219   :  { %v391_v33 = vadd.f32 %v390_v26, %v380_v25  ;;  %v802_v26 = vld [vmem:[#allocation5 + $0x29] ss:$0 sm:$0xff] }
 0x21b   :  { %v402_v34 = vadd.f32 %v401_v27, %v391_v33 }
 0x21d   :  { %v1135_v35 = vmax.f32 %v402_v34, 0.0  ;;  %v803_v34 = vld [vmem:[#allocation5 + $0x2a] ss:$0 sm:$0xff] }
 0x21f   :  { %434 = vperm.xlu0 %889, %v1135_v35   ;;  %412 = vperm.xlu1 %887, %v1135_v35  }
 0x223   :  { %892 = vset.pattern.permute.xlu0 %v1022_v29  ;;  %888 = vset.pattern.permute.xlu1 %v1018_v3  ;;  %v1031_v3 = vmov 17   ;;  %v1035_v29 = vmov 29  }
 0x224   :  { %467 = vperm.xlu0 %892, %v1135_v35   ;;  %423 = vperm.xlu1 %888, %v1135_v35  }
 0x228   :  { %895 = vset.pattern.permute.xlu0 %v1025_v32  ;;  %890 = vset.pattern.permute.xlu1 %v1019_v4  ;;  %v1032_v4 = vmov 20   ;;  %v1038_v32 = vmov 18  }
 0x229   :  { %500 = vperm.xlu0 %895, %v1135_v35   ;;  %445 = vperm.xlu1 %890, %v1135_v35  }
 0x22d   :  { %898 = vset.pattern.permute.xlu0 %v1026_v16  ;;  %891 = vset.pattern.permute.xlu1 %v1020_v5  ;;  %v1033_v5 = vmov 23   ;;  %v1039_v16 = vmov 19  }
 0x22e   :  { %533 = vperm.xlu0 %898, %v1135_v35   ;;  %456 = vperm.xlu1 %891, %v1135_v35  }
 0x232   :  { %901 = vset.pattern.permute.xlu0 %v1027_v17  ;;  %893 = vset.pattern.permute.xlu1 %v1021_v28  ;;  %v1034_v28 = vmov 26   ;;  %v1040_v17 = vmov 21  }
 0x233   :  { %566 = vperm.xlu0 %901, %v1135_v35   ;;  %478 = vperm.xlu1 %893, %v1135_v35  }
 0x237   :  { %904 = vset.pattern.permute.xlu0 %v1031_v3  ;;  %894 = vset.pattern.permute.xlu1 %v1024_v31  ;;  %v1037_v31 = vmov 16  }
 0x238   :  { %599 = vperm.xlu0 %904, %v1135_v35   ;;  %489 = vperm.xlu1 %894, %v1135_v35  }
 0x23c   :  { %907 = vset.pattern.permute.xlu0 %v1032_v4  ;;  %896 = vset.pattern.permute.xlu1 %v1023_v30  ;;  %v1036_v30 = vmov 15  }
 0x23d   :  { %632 = vperm.xlu0 %907, %v1135_v35   ;;  %511 = vperm.xlu1 %896, %v1135_v35  }
 0x241   :  { %910 = vset.pattern.permute.xlu0 %v1033_v5  ;;  %897 = vset.pattern.permute.xlu1 %v1028_v18  ;;  %v1041_v18 = vmov 22  }
 0x242   :  { %665 = vperm.xlu0 %910, %v1135_v35   ;;  %522 = vperm.xlu1 %897, %v1135_v35  }
 0x246   :  { %913 = vset.pattern.permute.xlu0 %v1034_v28  ;;  %899 = vset.pattern.permute.xlu1 %v1029_v19  ;;  %v1042_v19 = vmov 24   ;;  %v804_v28 = vld [vmem:[#allocation5 + $0x2b] ss:$0 sm:$0xff] }
 0x247   :  { %698 = vperm.xlu0 %913, %v1135_v35   ;;  %544 = vperm.xlu1 %899, %v1135_v35  }
 0x24b   :  { %916 = vset.pattern.permute.xlu0 %v1035_v29  ;;  %900 = vset.pattern.permute.xlu1 %v1030_v20  ;;  %v1043_v20 = vmov 25  }
 0x24c   :  { %731 = vperm.xlu0 %916, %v1135_v35   ;;  %555 = vperm.xlu1 %900, %v1135_v35  }
 0x250   :  { %902 = vset.pattern.permute.xlu1 %v1036_v30 }
 0x251   :  { %577 = vperm.xlu1 %902, %v1135_v35  }
 0x255   :  { %903 = vset.pattern.permute.xlu1 %v1037_v31 }
 0x256   :  { %588 = vperm.xlu1 %903, %v1135_v35  }
 0x25a   :  { %905 = vset.pattern.permute.xlu1 %v1038_v32  ;;  %v805_v32 = vld [vmem:[#allocation5 + $0x2c] ss:$0 sm:$0xff] }
 0x25b   :  { %610 = vperm.xlu1 %905, %v1135_v35  }
 0x25f   :  { %906 = vset.pattern.permute.xlu1 %v1039_v16 }
 0x260   :  { %621 = vperm.xlu1 %906, %v1135_v35  }
 0x264   :  { %908 = vset.pattern.permute.xlu1 %v1040_v17 }
 0x265   :  { %643 = vperm.xlu1 %908, %v1135_v35  }
 0x269   :  { %909 = vset.pattern.permute.xlu1 %v1041_v18  ;;  %v806_v18 = vld [vmem:[#allocation5 + $0x2d] ss:$0 sm:$0xff] }
 0x26a   :  { %654 = vperm.xlu1 %909, %v1135_v35  }
 0x26e   :  { %911 = vset.pattern.permute.xlu1 %v1042_v19 }
 0x26f   :  { %676 = vperm.xlu1 %911, %v1135_v35  }
 0x273   :  { %912 = vset.pattern.permute.xlu1 %v1043_v20 }
 0x274   :  { %687 = vperm.xlu1 %912, %v1135_v35  }
 0x278   :  { %914 = vset.pattern.permute.xlu1 %v1044_v36 }
 0x279   :  { %709 = vperm.xlu1 %914, %v1135_v35  }
 0x27d   :  { %915 = vset.pattern.permute.xlu1 %v1045_v37 }
 0x27e   :  { %720 = vperm.xlu1 %915, %v1135_v35  }
 0x29e   :  { %v413_v39 = vpop.permute.xlu1 %412  ;;  %v435_v46 = vpop.permute.xlu0 %434 }
 0x29f   :  { %v419_v40 = vmul.f32 %v791_v38, %v413_v39  ;;  %v441_v49 = vmul.f32 %v793_v45, %v435_v46  ;;  %v807_v38 = vld [vmem:[#allocation5 + $0x2e] ss:$0 sm:$0xff] }
 0x2a1   :  { %v420_v0 = vadd.f32 %v790_v41, %v419_v40 }
 0x2a3   :  { %v424_v43 = vpop.permute.xlu1 %423  ;;  %v468_v58 = vpop.permute.xlu0 %467 }
 0x2a4   :  { %v430_v44 = vmul.f32 %v792_v42, %v424_v43  ;;  %v474_v61 = vmul.f32 %v796_v57, %v468_v58  ;;  %v808_v42 = vld [vmem:[#allocation5 + $0x2f] ss:$0 sm:$0xff] }
 0x2a6   :  { %v431_v47 = vadd.f32 %v430_v44, %v420_v0  ;;  %v809_v44 = vld [vmem:[#allocation5 + $0x30] ss:$0 sm:$0xff] }
 0x2a8   :  { %v446_v50 = vpop.permute.xlu1 %445  ;;  %v442_v51 = vadd.f32 %v441_v49, %v431_v47  ;;  %v501_v11 = vpop.permute.xlu0 %500  ;;  %v810_v49 = vld [vmem:[#allocation5 + $0x31] ss:$0 sm:$0xff] }
 0x2a9   :  { %v452_v52 = vmul.f32 %v794_v48, %v446_v50  ;;  %v507_v14 = vmul.f32 %v799_v10, %v501_v11 }
 0x2ab   :  { %v453_v55 = vadd.f32 %v452_v52, %v442_v51 }
 0x2ad   :  { %v457_v54 = vpop.permute.xlu1 %456  ;;  %v534_v27 = vpop.permute.xlu0 %533 }
 0x2ae   :  { %v463_v56 = vmul.f32 %v795_v53, %v457_v54  ;;  %v540_v35 = vmul.f32 %v802_v26, %v534_v27  ;;  %v811_v53 = vld [vmem:[#allocation5 + $0x32] ss:$0 sm:$0xff] }
 0x2b0   :  { %v464_v59 = vadd.f32 %v463_v56, %v453_v55  ;;  %v812_v56 = vld [vmem:[#allocation5 + $0x33] ss:$0 sm:$0xff] }
 0x2b2   :  { %v479_v62 = vpop.permute.xlu1 %478  ;;  %v475_v63 = vadd.f32 %v474_v61, %v464_v59  ;;  %v567_v16 = vpop.permute.xlu0 %566  ;;  %v813_v61 = vld [vmem:[#allocation5 + $0x34] ss:$0 sm:$0xff] }
 0x2b3   :  { %v485_v2 = vmul.f32 %v797_v60, %v479_v62  ;;  %v573_v19 = vmul.f32 %v805_v32, %v567_v16 }
 0x2b5   :  { %v486_v8 = vadd.f32 %v485_v2, %v475_v63 }
 0x2b7   :  { %v490_v7 = vpop.permute.xlu1 %489  ;;  %v600_v43 = vpop.permute.xlu0 %599 }
 0x2b8   :  { %v496_v9 = vmul.f32 %v798_v6, %v490_v7  ;;  %v606_v45 = vmul.f32 %v808_v42, %v600_v43  ;;  %v814_v6 = vld [vmem:[#allocation5 + $0x35] ss:$0 sm:$0xff] }
 0x2ba   :  { %v497_v12 = vadd.f32 %v496_v9, %v486_v8  ;;  %v815_v9 = vld [vmem:[#allocation5 + $0x36] ss:$0 sm:$0xff] }
 0x2bc   :  { %v512_v15 = vpop.permute.xlu1 %511  ;;  %v508_v21 = vadd.f32 %v507_v14, %v497_v12  ;;  %v633_v54 = vpop.permute.xlu0 %632  ;;  %v816_v14 = vld [vmem:[#allocation5 + $0x37] ss:$0 sm:$0xff] }
 0x2bd   :  { %v518_v1 = vmul.f32 %v800_v13, %v512_v15  ;;  %v639_v57 = vmul.f32 %v811_v53, %v633_v54 }
 0x2bf   :  { %v519_v24 = vadd.f32 %v518_v1, %v508_v21 }
 0x2c1   :  { %v523_v23 = vpop.permute.xlu1 %522  ;;  %v666_v7 = vpop.permute.xlu0 %665 }
 0x2c2   :  { %v529_v25 = vmul.f32 %v801_v22, %v523_v23  ;;  %v672_v10 = vmul.f32 %v814_v6, %v666_v7  ;;  %v817_v22 = vld [vmem:[#allocation5 + $0x38] ss:$0 sm:$0xff] }
 0x2c4   :  { %v530_v33 = vadd.f32 %v529_v25, %v519_v24  ;;  %v818_v25 = vld [vmem:[#allocation5 + $0x39] ss:$0 sm:$0xff] }
 0x2c6   :  { %v545_v3 = vpop.permute.xlu1 %544  ;;  %v541_v4 = vadd.f32 %v540_v35, %v530_v33  ;;  %v699_v23 = vpop.permute.xlu0 %698  ;;  %v819_v35 = vld [vmem:[#allocation5 + $0x3a] ss:$0 sm:$0xff] }
 0x2c7   :  { %v551_v5 = vmul.f32 %v803_v34, %v545_v3  ;;  %v705_v26 = vmul.f32 %v817_v22, %v699_v23  ;;  %v820_v3 = vld [vmem:[#allocation5 + $0x3b] ss:$0 sm:$0xff] }
 0x2c9   :  { %v552_v30 = vadd.f32 %v551_v5, %v541_v4 }
 0x2cb   :  { %v556_v29 = vpop.permute.xlu1 %555  ;;  %v732_v4 = vpop.permute.xlu0 %731 }
 0x2cc   :  { %v562_v31 = vmul.f32 %v804_v28, %v556_v29 }
 0x2ce   :  { %v563_v17 = vadd.f32 %v562_v31, %v552_v30  ;;  %v738_v30 = vmul.f32 %v820_v3, %v732_v4 }
 0x2d0   :  { %v578_v20 = vpop.permute.xlu1 %577  ;;  %v574_v36 = vadd.f32 %v573_v19, %v563_v17 }
 0x2d1   :  { %v584_v37 = vmul.f32 %v806_v18, %v578_v20 }
 0x2d3   :  { %v585_v40 = vadd.f32 %v584_v37, %v574_v36 }
 0x2d5   :  { %v589_v39 = vpop.permute.xlu1 %588 }
 0x2d6   :  { %v595_v41 = vmul.f32 %v807_v38, %v589_v39 }
 0x2d8   :  { %v596_v0 = vadd.f32 %v595_v41, %v585_v40 }
 0x2da   :  { %v611_v46 = vpop.permute.xlu1 %610  ;;  %v607_v47 = vadd.f32 %v606_v45, %v596_v0 }
 0x2db   :  { %v617_v48 = vmul.f32 %v809_v44, %v611_v46 }
 0x2dd   :  { %v618_v51 = vadd.f32 %v617_v48, %v607_v47 }
 0x2df   :  { %v622_v50 = vpop.permute.xlu1 %621 }
 0x2e0   :  { %v628_v52 = vmul.f32 %v810_v49, %v622_v50 }
 0x2e2   :  { %v629_v55 = vadd.f32 %v628_v52, %v618_v51 }
 0x2e4   :  { %v644_v58 = vpop.permute.xlu1 %643  ;;  %v640_v59 = vadd.f32 %v639_v57, %v629_v55 }
 0x2e5   :  { %v650_v60 = vmul.f32 %v812_v56, %v644_v58 }
 0x2e7   :  { %v651_v63 = vadd.f32 %v650_v60, %v640_v59 }
 0x2e9   :  { %v655_v62 = vpop.permute.xlu1 %654 }
 0x2ea   :  { %v661_v2 = vmul.f32 %v813_v61, %v655_v62 }
 0x2ec   :  { %v662_v8 = vadd.f32 %v661_v2, %v651_v63 }
 0x2ee   :  { %v677_v11 = vpop.permute.xlu1 %676  ;;  %v673_v12 = vadd.f32 %v672_v10, %v662_v8 }
 0x2ef   :  { %v683_v13 = vmul.f32 %v815_v9, %v677_v11 }
 0x2f1   :  { %v684_v21 = vadd.f32 %v683_v13, %v673_v12 }
 0x2f3   :  { %v688_v15 = vpop.permute.xlu1 %687 }
 0x2f4   :  { %v694_v1 = vmul.f32 %v816_v14, %v688_v15 }
 0x2f6   :  { %v695_v24 = vadd.f32 %v694_v1, %v684_v21 }
 0x2f8   :  { %v710_v27 = vpop.permute.xlu1 %709  ;;  %v706_v33 = vadd.f32 %v705_v26, %v695_v24 }
 0x2f9   :  { %v716_v34 = vmul.f32 %v818_v25, %v710_v27 }
 0x2fb   :  { %v717_v28 = vadd.f32 %v716_v34, %v706_v33 }
 0x2fd   :  { %v721_v5 = vpop.permute.xlu1 %720 }
 0x2fe   :  { %v727_v29 = vmul.f32 %v819_v35, %v721_v5 }
 0x300   :  { %v728_v31 = vadd.f32 %v727_v29, %v717_v28 }
 0x302   :  { %v739_v32 = vadd.f32 %v738_v30, %v728_v31 }
 0x304   :  { %740 = vst [vmem:[#allocation8] sm:$0xff] %v739_v32 }
 0x305   :  { %994 = shalt.err (!%p991_p0)
}
 0x306   :  { %s995_s25 = scalar_lea.hbm %s1195_s3, 128 }
 0x307   :  { %p996_p1 = scmp.ne.s32.totalorder %s1195_s3, %s995_s25  ;;  %p999_p2 = scmp.lt.u32.totalorder %s995_s25, %s1195_s3 }
 0x309   :  { %p1001_p3 = pnand %p999_p2, %p996_p1 }
 0x30b   :  { %1004 = shalt.err (!%p1001_p3)
}
 0x30c   :  { %750 = dma.vmem_to_hbm [thread:$0]  %s748_s21, 128, %s1195_s3, [#allocation4]  }
 0x30d   :  { %1009 = dma.done.wait [#allocation4], 128  }
 0x30e   :  { %1010 = vsyncadd [#allocation4], 4294967168 }
 0x30f   :  { %754 = vsyncpa [#allocation3], 1 }
 0x310   :  { %755 = vsyncpa [#allocation6], 1 }
 0x311   :  { %756 = vsyncpa [#allocation4], 1 }

</bundles_post_ra>
